<compile_context>
chip_gen: v7x
topology: tpu7x:2x2x1
jax: 0.10.0
libtpu: 0.0.40
codegen_flags: <defaults>
</compile_context>

<pallas_src>
import jax
import jax.numpy as jnp
from jax.experimental import pallas as pl
from jax.experimental.pallas import tpu as pltpu

BN_EPS = 1e-5  # ResStemIN_arg['BN']['EPS']


def _round_up(x, m):
    return ((x + m - 1) // m) * m


# ---------------------------------------------------------------------------
# Kernel 1: tiled im2col matmul + per-tile channel sum / sum-of-squares
# ---------------------------------------------------------------------------
def conv_matmul_kernel(p_ref, w_ref, o_ref, stats_ref):
    # p_ref: (TILE_M, K) bf16, w_ref: (K, Cout) bf16 -> f32 accumulate on MXU
    acc = jnp.dot(p_ref[...], w_ref[...], preferred_element_type=jnp.float32)
    o_ref[...] = acc
    # Partial BN statistics for this tile (exact, in f32).  Zero-padded rows
    # contribute 0 to both sums; the wrapper divides by the true M.
    stats_ref[0, 0:1, :] = jnp.sum(acc, axis=0, keepdims=True)
    stats_ref[0, 1:2, :] = jnp.sum(acc * acc, axis=0, keepdims=True)


# ---------------------------------------------------------------------------
# Kernel 2: fused BN affine (precomputed scale/shift) + ReLU + MaxPool 3x3/s2
# ---------------------------------------------------------------------------
def bn_relu_pool_kernel(x_ref, scale_ref, shift_ref, o_ref, pad_sc, wmax_sc):
    # x_ref: (1, Ho, Wo, C) f32 conv output for one image
    Ho, Wo = x_ref.shape[1], x_ref.shape[2]
    Hp, Wp = o_ref.shape[1], o_ref.shape[2]

    # BN affine + ReLU (single FMA + max per element, all in f32).
    act = jnp.maximum(x_ref[0] * scale_ref[0, :] + shift_ref[0, :], 0.0)

    # Zero-pad into VMEM scratch: pad value 0 is equivalent to -inf because
    # act >= 0 after ReLU.
    pad_sc[...] = jnp.zeros_like(pad_sc)
    pad_sc[1:Ho + 1, 1:Wo + 1, :] = act

    # Separable max pool, stage 1: horizontal (W) max + stride-2 decimation.
    w0 = pad_sc[:, pl.ds(0, Wp, 2), :]
    w1 = pad_sc[:, pl.ds(1, Wp, 2), :]
    w2 = pad_sc[:, pl.ds(2, Wp, 2), :]
    wmax_sc[...] = jnp.maximum(jnp.maximum(w0, w1), w2)

    # Stage 2: vertical (H) max + stride-2 decimation.
    h0 = wmax_sc[pl.ds(0, Hp, 2), :, :]
    h1 = wmax_sc[pl.ds(1, Hp, 2), :, :]
    h2 = wmax_sc[pl.ds(2, Hp, 2), :, :]
    o_ref[0] = jnp.maximum(jnp.maximum(h0, h1), h2)


# ---------------------------------------------------------------------------
# Wrapper
# ---------------------------------------------------------------------------
@jax.jit
def res_stem_in(x_nchw, weight, gamma, beta):
    x_nchw = x_nchw.astype(jnp.float32)
    N, Cin, H, W = x_nchw.shape
    Cout = weight.shape[0]

    # ---- im2col for Conv 7x7 / stride 2 / pad 3 (bf16 halves HBM bytes) ----
    x = jnp.transpose(x_nchw, (0, 2, 3, 1)).astype(jnp.bfloat16)      # NHWC
    xp = jnp.pad(x, ((0, 0), (3, 3), (3, 3), (0, 0)))
    Ho = (H + 2 * 3 - 7) // 2 + 1
    Wo = (W + 2 * 3 - 7) // 2 + 1
    taps = []
    for kh in range(7):
        for kw in range(7):
            taps.append(xp[:, kh:kh + 2 * Ho:2, kw:kw + 2 * Wo:2, :])
    # (N, Ho, Wo, Cin, 49): minor order (cin, kh*7+kw) matches
    # weight.reshape(Cout, Cin*49).
    patches = jnp.stack(taps, axis=-1)
    M = N * Ho * Wo
    K = Cin * 49
    patches = patches.reshape(M, K)

    # ---- row tiling of the matmul ----
    TILE_M = 1024
    if M < TILE_M:
        TILE_M = _round_up(M, 8)
    M_pad = _round_up(M, TILE_M)
    if M_pad != M:
        patches = jnp.pad(patches, ((0, M_pad - M), (0, 0)))
    n_tiles = M_pad // TILE_M

    w_mat = weight.astype(jnp.bfloat16).reshape(Cout, K).T             # (K, Cout)

    conv_out, tile_stats = pl.pallas_call(
        conv_matmul_kernel,
        out_shape=(
            jax.ShapeDtypeStruct((M_pad, Cout), jnp.float32),
            jax.ShapeDtypeStruct((n_tiles, 2, Cout), jnp.float32),
        ),
        grid=(n_tiles,),
        in_specs=[
            pl.BlockSpec((TILE_M, K), lambda i: (i, 0)),
            pl.BlockSpec((K, Cout), lambda i: (0, 0)),
        ],
        out_specs=(
            pl.BlockSpec((TILE_M, Cout), lambda i: (i, 0)),
            pl.BlockSpec((1, 2, Cout), lambda i: (i, 0, 0)),
        ),
        compiler_params=pltpu.CompilerParams(
            dimension_semantics=("parallel",),
            vmem_limit_bytes=32 * 1024 * 1024,
        ),
        cost_estimate=pl.CostEstimate(
            flops=2 * M_pad * K * Cout,
            transcendentals=0,
            bytes_accessed=(M_pad * K * 2 + K * Cout * 2
                            + M_pad * Cout * 4 + n_tiles * 2 * Cout * 4),
        ),
    )(patches, w_mat)

    # ---- finalize BatchNorm batch statistics (training-mode, biased var) ----
    total = jnp.sum(tile_stats, axis=0)                   # (2, Cout)
    mean = total[0] / M
    var = jnp.maximum(total[1] / M - mean * mean, 0.0)
    inv_std = jax.lax.rsqrt(var + BN_EPS)
    g = gamma.astype(jnp.float32)
    b = beta.astype(jnp.float32)
    scale = (g * inv_std).reshape(1, Cout)
    shift = (b - mean * g * inv_std).reshape(1, Cout)

    y = conv_out[:M].reshape(N, Ho, Wo, Cout)

    # ---- fused BN + ReLU + MaxPool 3x3 / stride 2 / pad 1 ----
    Hp = (Ho + 2 * 1 - 3) // 2 + 1
    Wp = (Wo + 2 * 1 - 3) // 2 + 1

    pooled = pl.pallas_call(
        bn_relu_pool_kernel,
        out_shape=jax.ShapeDtypeStruct((N, Hp, Wp, Cout), jnp.float32),
        grid=(N,),
        in_specs=[
            pl.BlockSpec((1, Ho, Wo, Cout), lambda n: (n, 0, 0, 0)),
            pl.BlockSpec((1, Cout), lambda n: (0, 0)),
            pl.BlockSpec((1, Cout), lambda n: (0, 0)),
        ],
        out_specs=pl.BlockSpec((1, Hp, Wp, Cout), lambda n: (n, 0, 0, 0)),
        scratch_shapes=[
            pltpu.VMEM((Ho + 2, Wo + 2, Cout), jnp.float32),
            pltpu.VMEM((Ho + 2, Wp, Cout), jnp.float32),
        ],
        compiler_params=pltpu.CompilerParams(
            dimension_semantics=("parallel",),
        ),
    )(y, scale, shift)

    return jnp.transpose(pooled, (0, 3, 1, 2))             # back to NCHW


if __name__ == "__main__":
    key = jax.random.PRNGKey(0)
    k_x, k_w, k_g, k_b = jax.random.split(key, 4)

    N, Cin, H, W = 2, 4, 16, 16
    Cout = 16

    x = jax.random.normal(k_x, (N, Cin, H, W), dtype=jnp.float32)
    weight = jax.random.normal(k_w, (Cout, Cin, 7, 7), dtype=jnp.float32) * 0.1
    gamma = jax.random.uniform(k_g, (Cout,), dtype=jnp.float32,
                               minval=0.5, maxval=1.5)
    beta = jax.random.normal(k_b, (Cout,), dtype=jnp.float32) * 0.1

    out = res_stem_in(x, weight, gamma, beta)
    out = jax.block_until_ready(out)

    expected_shape = (N, Cout, (H // 2 + 1) // 2, (W // 2 + 1) // 2)  # (2,16,4,4)
    assert out.shape == expected_shape, out.shape
    assert bool(jnp.all(jnp.isfinite(out)))
    print("KERNEL_OK")
</pallas_src>

<mosaic_0001>
module attributes {stable_mosaic.version = 11 : i64} {
  func.func @conv_matmul_kernel(%arg0: i32, %arg1: memref<128x196xbf16, #tpu.memory_space<vmem>>, %arg2: memref<196x16xbf16, #tpu.memory_space<vmem>>, %arg3: memref<128x16xf32, #tpu.memory_space<vmem>>, %arg4: memref<1x2x16xf32, #tpu.memory_space<vmem>>) attributes {dimension_semantics = [#tpu.dimension_semantics<parallel>], iteration_bounds = array<i64: 1>, scalar_prefetch = 0 : i64, scratch_operands = 0 : i64, tpu.core_type = #tpu.core_type<tc>, window_params = [{transform_indices = @transform_0, window_bounds = array<i64: 128, 196>}, {pipeline_mode = #tpu.pipeline_mode<synchronous>, transform_indices = @transform_1, window_bounds = array<i64: 196, 16>}, {transform_indices = @transform_2, window_bounds = array<i64: 128, 16>}, {transform_indices = @transform_3, window_bounds = array<i64: 1, 2, 16>}]} {
    %c0 = arith.constant 0 : index
    %c0_0 = arith.constant 0 : index
    %0 = vector.load %arg1[%c0, %c0_0] : memref<128x196xbf16, #tpu.memory_space<vmem>>, vector<128x196xbf16>
    %c0_1 = arith.constant 0 : index
    %c0_2 = arith.constant 0 : index
    %1 = vector.load %arg2[%c0_1, %c0_2] : memref<196x16xbf16, #tpu.memory_space<vmem>>, vector<196x16xbf16>
    %cst = arith.constant dense<0.000000e+00> : vector<128x16xf32>
    %2 = tpu.matmul %0, %1, %cst {dimension_numbers = #tpu.dot_dimension_numbers<[1], [0], [0], [1], [0, 0, 1, 1], [], []>} : vector<128x196xbf16>, vector<196x16xbf16>, vector<128x16xf32> -> vector<128x16xf32>
    %c0_3 = arith.constant 0 : index
    %c0_4 = arith.constant 0 : index
    %3 = vector.load %arg3[%c0_3, %c0_4] : memref<128x16xf32, #tpu.memory_space<vmem>>, vector<128x16xf32>
    tpu.vector_store %arg3[%c0_3, %c0_4], %2 {strides = array<i32>} : memref<128x16xf32, #tpu.memory_space<vmem>>, vector<128x16xf32>,
    %cst_5 = arith.constant dense<0.000000e+00> : vector<16xf32>
    %4 = vector.multi_reduction <add>, %2, %cst_5 [0] : vector<128x16xf32> to vector<16xf32>
    %5 = vector.shape_cast %4 : vector<16xf32> to vector<1x16xf32>
    %c0_6 = arith.constant 0 : index
    %c0_7 = arith.constant 0 : index
    %c0_8 = arith.constant 0 : index
    %6 = vector.load %arg4[%c0_6, %c0_7, %c0_8] : memref<1x2x16xf32, #tpu.memory_space<vmem>>, vector<1x1x16xf32>
    %7 = vector.shape_cast %6 : vector<1x1x16xf32> to vector<1x16xf32>
    %8 = vector.shape_cast %5 : vector<1x16xf32> to vector<1x1x16xf32>
    tpu.vector_store %arg4[%c0_6, %c0_7, %c0_8], %8 {strides = array<i32>} : memref<1x2x16xf32, #tpu.memory_space<vmem>>, vector<1x1x16xf32>,
    %9 = arith.mulf %2, %2 : vector<128x16xf32>
    %cst_9 = arith.constant dense<0.000000e+00> : vector<16xf32>
    %10 = vector.multi_reduction <add>, %9, %cst_9 [0] : vector<128x16xf32> to vector<16xf32>
    %11 = vector.shape_cast %10 : vector<16xf32> to vector<1x16xf32>
    %c0_10 = arith.constant 0 : index
    %c1 = arith.constant 1 : index
    %c0_11 = arith.constant 0 : index
    %12 = vector.load %arg4[%c0_10, %c1, %c0_11] : memref<1x2x16xf32, #tpu.memory_space<vmem>>, vector<1x1x16xf32>
    %13 = vector.shape_cast %12 : vector<1x1x16xf32> to vector<1x16xf32>
    %14 = vector.shape_cast %11 : vector<1x16xf32> to vector<1x1x16xf32>
    tpu.vector_store %arg4[%c0_10, %c1, %c0_11], %14 {strides = array<i32>} : memref<1x2x16xf32, #tpu.memory_space<vmem>>, vector<1x1x16xf32>,
    return
  }
  func.func @transform_0(%arg0: i32) -> (i32, i32) {
    %c0_i32 = arith.constant 0 : i32
    %c0_i32_0 = arith.constant 0 : i32
    return %arg0, %c0_i32 : i32, i32
  }
  func.func @transform_1(%arg0: i32) -> (i32, i32) {
    %c0_i32 = arith.constant 0 : i32
    %c0_i32_0 = arith.constant 0 : i32
    %c0_i32_1 = arith.constant 0 : i32
    return %c0_i32, %c0_i32_0 : i32, i32
  }
  func.func @transform_2(%arg0: i32) -> (i32, i32) {
    %c0_i32 = arith.constant 0 : i32
    %c0_i32_0 = arith.constant 0 : i32
    return %arg0, %c0_i32 : i32, i32
  }
  func.func @transform_3(%arg0: i32) -> (i32, i32, i32) {
    %c0_i32 = arith.constant 0 : i32
    %c0_i32_0 = arith.constant 0 : i32
    %c0_i32_1 = arith.constant 0 : i32
    return %arg0, %c0_i32, %c0_i32_0 : i32, i32, i32
  }
}

module attributes {stable_mosaic.version = 11 : i64} {
  func.func @bn_relu_pool_kernel(%arg0: i32, %arg1: memref<1x8x8x16xf32, #tpu.memory_space<vmem>>, %arg2: memref<1x16xf32, #tpu.memory_space<vmem>>, %arg3: memref<1x16xf32, #tpu.memory_space<vmem>>, %arg4: memref<1x4x4x16xf32, #tpu.memory_space<vmem>>, %arg5: memref<10x10x16xf32, #tpu.memory_space<vmem>>, %arg6: memref<10x4x16xf32, #tpu.memory_space<vmem>>) attributes {dimension_semantics = [#tpu.dimension_semantics<parallel>], iteration_bounds = array<i64: 2>, scalar_prefetch = 0 : i64, scratch_operands = 2 : i64, tpu.core_type = #tpu.core_type<tc>, window_params = [{transform_indices = @transform_0, window_bounds = array<i64: 1, 8, 8, 16>}, {pipeline_mode = #tpu.pipeline_mode<synchronous>, transform_indices = @transform_1, window_bounds = array<i64: 1, 16>}, {pipeline_mode = #tpu.pipeline_mode<synchronous>, transform_indices = @transform_2, window_bounds = array<i64: 1, 16>}, {transform_indices = @transform_3, window_bounds = array<i64: 1, 4, 4, 16>}]} {
    %c0 = arith.constant 0 : index
    %c0_0 = arith.constant 0 : index
    %c0_1 = arith.constant 0 : index
    %c0_2 = arith.constant 0 : index
    %0 = vector.load %arg1[%c0, %c0_0, %c0_1, %c0_2] : memref<1x8x8x16xf32, #tpu.memory_space<vmem>>, vector<1x8x8x16xf32>
    %1 = vector.shape_cast %0 : vector<1x8x8x16xf32> to vector<8x8x16xf32>
    %c0_3 = arith.constant 0 : index
    %c0_4 = arith.constant 0 : index
    %2 = vector.load %arg2[%c0_3, %c0_4] : memref<1x16xf32, #tpu.memory_space<vmem>>, vector<1x16xf32>
    %3 = vector.shape_cast %2 : vector<1x16xf32> to vector<16xf32>
    %4 = vector.shape_cast %3 : vector<16xf32> to vector<1x1x16xf32>
    %5 = vector.broadcast %4 : vector<1x1x16xf32> to vector<8x8x16xf32>
    %6 = arith.mulf %1, %5 : vector<8x8x16xf32>
    %c0_5 = arith.constant 0 : index
    %c0_6 = arith.constant 0 : index
    %7 = vector.load %arg3[%c0_5, %c0_6] : memref<1x16xf32, #tpu.memory_space<vmem>>, vector<1x16xf32>
    %8 = vector.shape_cast %7 : vector<1x16xf32> to vector<16xf32>
    %9 = vector.shape_cast %8 : vector<16xf32> to vector<1x1x16xf32>
    %10 = vector.broadcast %9 : vector<1x1x16xf32> to vector<8x8x16xf32>
    %11 = arith.addf %6, %10 : vector<8x8x16xf32>
    %cst = arith.constant 0.000000e+00 : f32
    %12 = vector.broadcast %cst : f32 to vector<8x8x16xf32>
    %13 = arith.maximumf %11, %12 : vector<8x8x16xf32>
    %cst_7 = arith.constant 0.000000e+00 : f32
    %14 = vector.broadcast %cst_7 : f32 to vector<10x10x16xf32>
    %c0_8 = arith.constant 0 : index
    %c0_9 = arith.constant 0 : index
    %c0_10 = arith.constant 0 : index
    %15 = vector.load %arg5[%c0_8, %c0_9, %c0_10] : memref<10x10x16xf32, #tpu.memory_space<vmem>>, vector<10x10x16xf32>
    tpu.vector_store %arg5[%c0_8, %c0_9, %c0_10], %14 {strides = array<i32>} : memref<10x10x16xf32, #tpu.memory_space<vmem>>, vector<10x10x16xf32>,
    %c1 = arith.constant 1 : index
    %c1_11 = arith.constant 1 : index
    %c0_12 = arith.constant 0 : index
    %16 = vector.load %arg5[%c1, %c1_11, %c0_12] : memref<10x10x16xf32, #tpu.memory_space<vmem>>, vector<8x8x16xf32>
    tpu.vector_store %arg5[%c1, %c1_11, %c0_12], %13 {strides = array<i32>} : memref<10x10x16xf32, #tpu.memory_space<vmem>>, vector<8x8x16xf32>,
    %c0_13 = arith.constant 0 : index
    %c0_14 = arith.constant 0 : index
    %c0_15 = arith.constant 0 : index
    %17 = tpu.strided_load %arg5[%c0_13, %c0_14, %c0_15] {strides = array<i32: 1, 2, 1>} : memref<10x10x16xf32, #tpu.memory_space<vmem>>, vector<10x4x16xf32>
    %c0_16 = arith.constant 0 : index
    %c1_17 = arith.constant 1 : index
    %c0_18 = arith.constant 0 : index
    %18 = tpu.strided_load %arg5[%c0_16, %c1_17, %c0_18] {strides = array<i32: 1, 2, 1>} : memref<10x10x16xf32, #tpu.memory_space<vmem>>, vector<10x4x16xf32>
    %c0_19 = arith.constant 0 : index
    %c2 = arith.constant 2 : index
    %c0_20 = arith.constant 0 : index
    %19 = tpu.strided_load %arg5[%c0_19, %c2, %c0_20] {strides = array<i32: 1, 2, 1>} : memref<10x10x16xf32, #tpu.memory_space<vmem>>, vector<10x4x16xf32>
    %20 = arith.maximumf %17, %18 : vector<10x4x16xf32>
    %21 = arith.maximumf %20, %19 : vector<10x4x16xf32>
    %c0_21 = arith.constant 0 : index
    %c0_22 = arith.constant 0 : index
    %c0_23 = arith.constant 0 : index
    %22 = vector.load %arg6[%c0_21, %c0_22, %c0_23] : memref<10x4x16xf32, #tpu.memory_space<vmem>>, vector<10x4x16xf32>
    tpu.vector_store %arg6[%c0_21, %c0_22, %c0_23], %21 {strides = array<i32>} : memref<10x4x16xf32, #tpu.memory_space<vmem>>, vector<10x4x16xf32>,
    %c0_24 = arith.constant 0 : index
    %c0_25 = arith.constant 0 : index
    %c0_26 = arith.constant 0 : index
    %23 = tpu.strided_load %arg6[%c0_24, %c0_25, %c0_26] {strides = array<i32: 2, 1, 1>} : memref<10x4x16xf32, #tpu.memory_space<vmem>>, vector<4x4x16xf32>
    %c1_27 = arith.constant 1 : index
    %c0_28 = arith.constant 0 : index
    %c0_29 = arith.constant 0 : index
    %24 = tpu.strided_load %arg6[%c1_27, %c0_28, %c0_29] {strides = array<i32: 2, 1, 1>} : memref<10x4x16xf32, #tpu.memory_space<vmem>>, vector<4x4x16xf32>
    %c2_30 = arith.constant 2 : index
    %c0_31 = arith.constant 0 : index
    %c0_32 = arith.constant 0 : index
    %25 = tpu.strided_load %arg6[%c2_30, %c0_31, %c0_32] {strides = array<i32: 2, 1, 1>} : memref<10x4x16xf32, #tpu.memory_space<vmem>>, vector<4x4x16xf32>
    %26 = arith.maximumf %23, %24 : vector<4x4x16xf32>
    %27 = arith.maximumf %26, %25 : vector<4x4x16xf32>
    %c0_33 = arith.constant 0 : index
    %c0_34 = arith.constant 0 : index
    %c0_35 = arith.constant 0 : index
    %c0_36 = arith.constant 0 : index
    %28 = vector.load %arg4[%c0_33, %c0_34, %c0_35, %c0_36] : memref<1x4x4x16xf32, #tpu.memory_space<vmem>>, vector<1x4x4x16xf32>
    %29 = vector.shape_cast %28 : vector<1x4x4x16xf32> to vector<4x4x16xf32>
    %30 = vector.shape_cast %27 : vector<4x4x16xf32> to vector<1x4x4x16xf32>
    tpu.vector_store %arg4[%c0_33, %c0_34, %c0_35, %c0_36], %30 {strides = array<i32>} : memref<1x4x4x16xf32, #tpu.memory_space<vmem>>, vector<1x4x4x16xf32>,
    return
  }
  func.func @transform_0(%arg0: i32) -> (i32, i32, i32, i32) {
    %c0_i32 = arith.constant 0 : i32
    %c0_i32_0 = arith.constant 0 : i32
    %c0_i32_1 = arith.constant 0 : i32
    %c0_i32_2 = arith.constant 0 : i32
    return %arg0, %c0_i32, %c0_i32_0, %c0_i32_1 : i32, i32, i32, i32
  }
  func.func @transform_1(%arg0: i32) -> (i32, i32) {
    %c0_i32 = arith.constant 0 : i32
    %c0_i32_0 = arith.constant 0 : i32
    %c0_i32_1 = arith.constant 0 : i32
    return %c0_i32, %c0_i32_0 : i32, i32
  }
  func.func @transform_2(%arg0: i32) -> (i32, i32) {
    %c0_i32 = arith.constant 0 : i32
    %c0_i32_0 = arith.constant 0 : i32
    %c0_i32_1 = arith.constant 0 : i32
    return %c0_i32, %c0_i32_0 : i32, i32
  }
  func.func @transform_3(%arg0: i32) -> (i32, i32, i32, i32) {
    %c0_i32 = arith.constant 0 : i32
    %c0_i32_0 = arith.constant 0 : i32
    %c0_i32_1 = arith.constant 0 : i32
    %c0_i32_2 = arith.constant 0 : i32
    return %arg0, %c0_i32, %c0_i32_0, %c0_i32_1 : i32, i32, i32, i32
  }
}

</mosaic_0001>

<bundles_post_ra>
// kernel: res_stem_in.3
= control target key start
LH: loop header
LB: loop body
LE: loop exit
PB: predicated region body
PF: predicated region fallthrough
CT: control target
= control target key end

     0   :  { %8 = vsyncpa [#allocation5], 0  ;;  %s743_s0 = inlined_call_operand.vmem [shape: f32[2,8,8,16], index: 0, kind: input, shape index: {}]   ;;  %s744_s1 = inlined_call_operand.vmem [shape: f32[1,16], index: 1, kind: input, shape index: {}]   ;;  %s745_s2 = inlined_call_operand.vmem [shape: f32[1,16], index: 2, kind: input, shape index: {}]   ;;  %s746_s3 = inlined_call_operand.hbm [shape: f32[2,4,4,16], index: 3, kind: output, shape index: {}]  }
   0x1   :  { %10 = vsyncpa [#allocation5 + $0x1], 0  ;;  %s584_s12 = smov 0   ;;  %s586_s13 = smov 0  }
   0x2   :  { %s588_s14 = smov 0   ;;  %s590_s15 = smov 0  }
   0x3 LB: > { %s605_s16 = sadd.s32 4294967295, %s558_s15   ;;  %s438_s17 = sadd.s32 4294967294, %s558_s15   ;;  %s558_s15 = sphi %s590_s15, %s752_s15   ;;  %s554_s14 = sphi %s588_s14, %s751_s14   ;;  %s550_s13 = sphi %s586_s13, %s750_s13   ;;  %s546_s12 = sphi %s584_s12, %s749_s12  }
   0x4   : > { %s609_s18 = sadd.s32 1, %s558_s15   ;;  %s91_s19 = sadd.s32 1, %s554_s14 }
   0x5   : > { %s88_s20 = ssub.s32 %s558_s15, %s609_s18  ;;  %p101_p0 = scmp.ne.s32.totalorder %s554_s14, %s550_s13 }
   0x6   : > { %p89_p1 = scmp.eq.s32.totalorder %s88_s20, 0  ;;  %p102_p2 = scmp.eq.s32.totalorder %s605_s16, 1 }
   0x7   : > { %p107_p3 = scmp.ne.s32.totalorder %s550_s13, %s546_s12  ;;  %p108_p4 = scmp.eq.s32.totalorder %s438_s17, 1 }
   0x8   : > { %s620_s21 = scalar_select %p89_p1, %s554_s14, %s91_s19  }
   0x9   : > { %p622_p5 = por %p102_p2, %p101_p0  ;;  %p626_p6 = por %p108_p4, %p107_p3 }
   0xa   : > { %p441_p7 = scmp.ge.s32.totalorder %s558_s15, 1  ;;  %p140_p8 = scmp.lt.s32.totalorder %s558_s15, 3 }
   0xc   : > { %p141_p9 = pnand %p441_p7, %p140_p8 }
   0xd   : > { %vm215_vm0 = vcmask (!%p141_p9), 130048   ;;  %vm217_vm1 = vcmask (!%p141_p9), 123904   ;;  %p164_p10 = scmp.lt.s32.totalorder (!%p141_p9), %s605_s16, 1  ;;  %v560_v0 = vmov (!%p141_p9), 0.0   ;;  %v445_v1 = vld [vmem:[%s744_s1] ss:$0 sm:$0xff] (!%p141_p9) }
   0xe   : > { %144 = sbr.rel (%p141_p9) target bundleno = 82 (0x52), region = 32  ;;  %216 = vst.msk [vmem:[#allocation2] sm:$0xff] (!%p141_p9), %vm215_vm0, %v560_v0  ;;  %219 = vst.msk [vmem:[#allocation2 + $0x10] sm:$0xff] (!%p141_p9), %vm215_vm0, %v560_v0  ;;  %v446_v2 = vld [vmem:[%s745_s2] ss:$0 sm:$0xff] (!%p141_p9)  ;;  %vm325_vm2 = vcmask (!%p141_p9), 125952  }
   0xf   : > { %221 = vst.msk [vmem:[#allocation2 + $0x20] sm:$0xff] (!%p141_p9), %vm215_vm0, %v560_v0  ;;  %223 = vst.msk [vmem:[#allocation2 + $0x30] sm:$0xff] (!%p141_p9), %vm215_vm0, %v560_v0  ;;  %s161_s6 = sand.u32 (!%p141_p9), 1, %s550_s13   ;;  %s453_s10 = sshll.u32 (!%p141_p9), %s605_s16, 8 }
  0x10   : > { %225 = vst.msk [vmem:[#allocation2 + $0x40] sm:$0xff] (!%p141_p9), %vm215_vm0, %v560_v0  ;;  %227 = vst.msk [vmem:[#allocation2 + $0x50] sm:$0xff] (!%p141_p9), %vm215_vm0, %v560_v0  ;;  %s677_s7 = sshll.u32 (!%p141_p9), %s161_s6, 4  ;;  %s697_s19 = scalar_lea.hbm (!%p141_p9), %s746_s3, %s453_s10 }
  0x11   : > { %229 = vst.msk [vmem:[#allocation2 + $0x60] sm:$0xff] (!%p141_p9), %vm215_vm0, %v560_v0  ;;  %231 = vst.msk [vmem:[#allocation2 + $0x70] sm:$0xff] (!%p141_p9), %vm215_vm0, %v560_v0  ;;  %s163_s8 = scalar_lea.vmem (!%p141_p9), [#allocation4], %s677_s7 }
  0x12   : > { %233 = vst.msk [vmem:[#allocation2 + $0x80] sm:$0xff] (!%p141_p9), %vm215_vm0, %v560_v0  ;;  %235 = vst.msk [vmem:[#allocation2 + $0x90] sm:$0xff] (!%p141_p9), %vm215_vm0, %v560_v0  ;;  %s376_s9 = sshll.u32 (!%p141_p9), %s163_s8, 4  ;;  %s691_s9 = int_to_ptr.vmem [resolvable:$true] %s376_s9 }
  0x13   : > { %220 = vst.msk [vmem:[#allocation2 + $0x18] sm:$0x3] (!%p141_p9), %vm217_vm1, %v560_v0  ;;  %218 = vst.msk [vmem:[#allocation2 + $0x8] sm:$0x3] (!%p141_p9), %vm217_vm1, %v560_v0  ;;  %s496_s20 = scalar_lea.vmem (!%p141_p9), %s691_s9, 256 }
  0x14   : > { %222 = vst.msk [vmem:[#allocation2 + $0x28] sm:$0x3] (!%p141_p9), %vm217_vm1, %v560_v0  ;;  %224 = vst.msk [vmem:[#allocation2 + $0x38] sm:$0x3] (!%p141_p9), %vm217_vm1, %v560_v0  ;;  %p497_p11 = scmp.ne.s32.totalorder (!%p141_p9), %s691_s9, %s496_s20 }
  0x15   : > { %226 = vst.msk [vmem:[#allocation2 + $0x48] sm:$0x3] %vm217_vm1, %v560_v0  ;;  %228 = vst.msk [vmem:[#allocation2 + $0x58] sm:$0x3] %vm217_vm1, %v560_v0  ;;  %s165_s24 = scalar_select %p164_p10, %s605_s16, 1 }
  0x16   : > { %230 = vst.msk [vmem:[#allocation2 + $0x68] sm:$0x3] %vm217_vm1, %v560_v0  ;;  %232 = vst.msk [vmem:[#allocation2 + $0x78] sm:$0x3] %vm217_vm1, %v560_v0  ;;  %s702_s16 = scalar_lea.sflag [#allocation5], %s161_s6  ;;  %p498_p12 = pnand %p497_p11, %p622_p5 }
  0x17   : > { %234 = vst.msk [vmem:[#allocation2 + $0x88] sm:$0x3] %vm217_vm1, %v560_v0  ;;  %236 = vst.msk [vmem:[#allocation2 + $0x98] sm:$0x3] %vm217_vm1, %v560_v0  ;;  %s452_s25 = sshll.u32 %s165_s24, 6  ;;  %s561_s24 = smov [#allocation4]  }
  0x18   : > { %s168_s30 = scalar_lea.vmem %s743_s0, %s452_s25  ;;  %v246_v21 = vld [vmem:[#allocation2] ss:$2 sm:$0xf]  ;;  %v266_v22 = vld [vmem:[#allocation2 + $0x1] ss:$2 sm:$0xf]  ;;  %p499_p13 = pneg %p498_p12 }
  0x19   : > { %v169_v3 = vld [vmem:[%s168_s30] sm:$0xff]  ;;  %v170_v4 = vld [vmem:[%s168_s30 + $0x8] sm:$0xff]  ;;  %v171_v5 = vld [vmem:[%s168_s30 + $0x10] sm:$0xff]  ;;  %v305_v37 = vmax.f32 %v246_v21, %v266_v22  ;;  %s500_s25 = sshll.u32 %s561_s24, 4  ;;  %s501_s25 = int_to_ptr.vmem [resolvable:$false] %s500_s25 }
  0x1a   : > { %v184_v6 = vmul.f32 %v445_v1, %v169_v3  ;;  %v185_v7 = vmul.f32 %v445_v1, %v170_v4  ;;  %v186_v8 = vmul.f32 %v445_v1, %v171_v5  ;;  %v172_v9 = vld [vmem:[%s168_s30 + $0x18] sm:$0xff]  ;;  %v173_v10 = vld [vmem:[%s168_s30 + $0x20] sm:$0xff]  ;;  %v174_v11 = vld [vmem:[%s168_s30 + $0x28] sm:$0xff]  ;;  %s502_s26 = scalar_lea.vmem %s501_s25, 512  ;;  %p503_p0 = scmp.lt.s32.totalorder %s691_s9, %s501_s25 }
  0x1b   : > { %v187_v12 = vmul.f32 %v445_v1, %v172_v9  ;;  %v188_v13 = vmul.f32 %v445_v1, %v173_v10  ;;  %v189_v14 = vmul.f32 %v445_v1, %v174_v11  ;;  %v175_v15 = vld [vmem:[%s168_s30 + $0x30] sm:$0xff]  ;;  %v176_v16 = vld [vmem:[%s168_s30 + $0x38] sm:$0xff]  ;;  %v286_v31 = vld [vmem:[#allocation2 + $0x2] ss:$2 sm:$0xf]  ;;  %p504_p1 = scmp.lt.s32.totalorder %s502_s26, %s496_s20 }
  0x1c   : > { %v199_v17 = vadd.f32 %v446_v2, %v184_v6  ;;  %v200_v18 = vadd.f32 %v446_v2, %v185_v7  ;;  %v201_v19 = vadd.f32 %v446_v2, %v186_v8  ;;  %v190_v20 = vmul.f32 %v445_v1, %v175_v15 }
  0x1d   : > { %v202_v23 = vadd.f32 %v446_v2, %v187_v12  ;;  %v203_v24 = vadd.f32 %v446_v2, %v188_v13  ;;  %v204_v25 = vadd.f32 %v446_v2, %v189_v14  ;;  %v191_v26 = vmul.f32 %v445_v1, %v176_v16  ;;  %p505_p2 = por %p504_p1, %p503_p0 }
  0x1e   : > { %v207_v27 = vmax.f32 %v199_v17, 0.0  ;;  %v208_v28 = vmax.f32 %v200_v18, 0.0  ;;  %v209_v29 = vmax.f32 %v201_v19, 0.0  ;;  %v205_v30 = vadd.f32 %v446_v2, %v190_v20 }
  0x1f   : > { %v210_v32 = vmax.f32 %v202_v23, 0.0  ;;  %v211_v33 = vmax.f32 %v203_v24, 0.0  ;;  %v212_v34 = vmax.f32 %v204_v25, 0.0  ;;  %v206_v35 = vadd.f32 %v446_v2, %v191_v26  ;;  %p506_p3 = pnand %p505_p2, %p499_p13 }
  0x20   : > { %238 = vst.msk [vmem:[#allocation2 + $0x11] sm:$0xff] %vm215_vm0, %v207_v27  ;;  %239 = vst.msk [vmem:[#allocation2 + $0x21] sm:$0xff] %vm215_vm0, %v208_v28  ;;  %v213_v36 = vmax.f32 %v205_v30, 0.0  ;;  %v315_v39 = vmax.f32 %v305_v37, %v286_v31 }
  0x21   : > { %240 = vst.msk [vmem:[#allocation2 + $0x31] sm:$0xff] %vm215_vm0, %v209_v29  ;;  %241 = vst.msk [vmem:[#allocation2 + $0x41] sm:$0xff] %vm215_vm0, %v210_v32  ;;  %v214_v38 = vmax.f32 %v206_v35, 0.0 }
  0x22   : > { %242 = vst.msk [vmem:[#allocation2 + $0x51] sm:$0xff] %vm215_vm0, %v211_v33  ;;  %243 = vst.msk [vmem:[#allocation2 + $0x61] sm:$0xff] %vm215_vm0, %v212_v34 }
  0x23   : > { %244 = vst.msk [vmem:[#allocation2 + $0x71] sm:$0xff] %vm215_vm0, %v213_v36  ;;  %245 = vst.msk [vmem:[#allocation2 + $0x81] sm:$0xff] %vm215_vm0, %v214_v38 }
  0x24   : > { %326 = vst.msk [vmem:[#allocation3] sm:$0xf] %vm325_vm2, %v315_v39 }
  0x27   : > { %v248_v40 = vld [vmem:[#allocation2 + $0x10] ss:$2 sm:$0xf]  ;;  %v268_v41 = vld [vmem:[#allocation2 + $0x11] ss:$2 sm:$0xf] }
  0x28   : > { %v288_v42 = vld [vmem:[#allocation2 + $0x12] ss:$2 sm:$0xf]  ;;  %v306_v43 = vmax.f32 %v248_v40, %v268_v41  ;;  %v250_v44 = vld [vmem:[#allocation2 + $0x20] ss:$2 sm:$0xf] }
  0x29   : > { %v270_v45 = vld [vmem:[#allocation2 + $0x21] ss:$2 sm:$0xf]  ;;  %v290_v46 = vld [vmem:[#allocation2 + $0x22] ss:$2 sm:$0xf] }
  0x2a   : > { %v316_v47 = vmax.f32 %v306_v43, %v288_v42  ;;  %v307_v48 = vmax.f32 %v250_v44, %v270_v45  ;;  %v252_v49 = vld [vmem:[#allocation2 + $0x30] ss:$2 sm:$0xf]  ;;  %v272_v50 = vld [vmem:[#allocation2 + $0x31] ss:$2 sm:$0xf] }
  0x2b   : > { %v292_v51 = vld [vmem:[#allocation2 + $0x32] ss:$2 sm:$0xf]  ;;  %v308_v52 = vmax.f32 %v252_v49, %v272_v50  ;;  %v254_v53 = vld [vmem:[#allocation2 + $0x40] ss:$2 sm:$0xf] }
  0x2c   : > { %327 = vst.msk [vmem:[#allocation3 + $0x4] sm:$0xf] %vm325_vm2, %v316_v47  ;;  %v317_v54 = vmax.f32 %v307_v48, %v290_v46  ;;  %v274_v55 = vld [vmem:[#allocation2 + $0x41] ss:$2 sm:$0xf] }
  0x2d   : > { %v294_v56 = vld [vmem:[#allocation2 + $0x42] ss:$2 sm:$0xf]  ;;  %v318_v57 = vmax.f32 %v308_v52, %v292_v51  ;;  %v309_v58 = vmax.f32 %v254_v53, %v274_v55  ;;  %v256_v59 = vld [vmem:[#allocation2 + $0x50] ss:$2 sm:$0xf] }
  0x2e   : > { %v276_v60 = vld [vmem:[#allocation2 + $0x51] ss:$2 sm:$0xf]  ;;  %328 = vst.msk [vmem:[#allocation3 + $0x8] sm:$0xf] %vm325_vm2, %v317_v54 }
  0x2f   : > { %v296_v61 = vld [vmem:[#allocation2 + $0x52] ss:$2 sm:$0xf]  ;;  %v310_v62 = vmax.f32 %v256_v59, %v276_v60  ;;  %v258_v63 = vld [vmem:[#allocation2 + $0x60] ss:$2 sm:$0xf]  ;;  %v319_v0 = vmax.f32 %v309_v58, %v294_v56 }
  0x30   : > { %329 = vst.msk [vmem:[#allocation3 + $0xc] sm:$0xf] %vm325_vm2, %v318_v57  ;;  %v278_v1 = vld [vmem:[#allocation2 + $0x61] ss:$2 sm:$0xf] }
  0x31   : > { %v298_v2 = vld [vmem:[#allocation2 + $0x62] ss:$2 sm:$0xf]  ;;  %v320_v3 = vmax.f32 %v310_v62, %v296_v61  ;;  %v311_v4 = vmax.f32 %v258_v63, %v278_v1  ;;  %v260_v5 = vld [vmem:[#allocation2 + $0x70] ss:$2 sm:$0xf] }
  0x32   : > { %v280_v6 = vld [vmem:[#allocation2 + $0x71] ss:$2 sm:$0xf]  ;;  %330 = vst.msk [vmem:[#allocation3 + $0x10] sm:$0xf] %vm325_vm2, %v319_v0 }
  0x33   : > { %v300_v7 = vld [vmem:[#allocation2 + $0x72] ss:$2 sm:$0xf]  ;;  %v312_v8 = vmax.f32 %v260_v5, %v280_v6  ;;  %v262_v9 = vld [vmem:[#allocation2 + $0x80] ss:$2 sm:$0xf]  ;;  %v321_v10 = vmax.f32 %v311_v4, %v298_v2 }
  0x34   : > { %331 = vst.msk [vmem:[#allocation3 + $0x14] sm:$0xf] %vm325_vm2, %v320_v3  ;;  %v282_v11 = vld [vmem:[#allocation2 + $0x81] ss:$2 sm:$0xf] }
  0x35   : > { %v302_v12 = vld [vmem:[#allocation2 + $0x82] ss:$2 sm:$0xf]  ;;  %v322_v13 = vmax.f32 %v312_v8, %v300_v7  ;;  %v313_v14 = vmax.f32 %v262_v9, %v282_v11  ;;  %332 = vst.msk [vmem:[#allocation3 + $0x18] sm:$0xf] %vm325_vm2, %v321_v10 }
  0x36   : > { %v336_v15 = vld [vmem:[#allocation3] sm:$0xf]  ;;  %v341_v16 = vld [vmem:[#allocation3 + $0x4] sm:$0xf]  ;;  %v346_v19 = vld [vmem:[#allocation3 + $0x8] sm:$0xf] }
  0x37   : > { %v350_v17 = vmax.f32 %v336_v15, %v341_v16  ;;  %333 = vst.msk [vmem:[#allocation3 + $0x1c] sm:$0xf] %vm325_vm2, %v322_v13  ;;  %v323_v18 = vmax.f32 %v313_v14, %v302_v12  ;;  %v337_v20 = vld [vmem:[#allocation3 + $0x8] sm:$0xf]  ;;  %v342_v22 = vld [vmem:[#allocation3 + $0xc] sm:$0xf] }
  0x38   : > { %v351_v23 = vmax.f32 %v337_v20, %v342_v22 }
  0x39   : > { %v354_v21 = vmax.f32 %v350_v17, %v346_v19  ;;  %334 = vst.msk [vmem:[#allocation3 + $0x20] sm:$0xf] %vm325_vm2, %v323_v18  ;;  %v347_v24 = vld [vmem:[#allocation3 + $0x10] sm:$0xf] }
  0x3a   : > { %v338_v25 = vld [vmem:[#allocation3 + $0x10] sm:$0xf]  ;;  %v355_v26 = vmax.f32 %v351_v23, %v347_v24 }
  0x3b   : > { %358 = vst.msk [vmem:[%s163_s8] sm:$0xf] %vm325_vm2, %v354_v21  ;;  %v343_v27 = vld [vmem:[#allocation3 + $0x14] sm:$0xf] }
  0x3c   : > { %v352_v28 = vmax.f32 %v338_v25, %v343_v27  ;;  %359 = vst.msk [vmem:[%s163_s8 + $0x4] sm:$0xf] %vm325_vm2, %v355_v26  ;;  %v348_v29 = vld [vmem:[#allocation3 + $0x18] sm:$0xf] }
  0x3d   : > { %v339_v30 = vld [vmem:[#allocation3 + $0x18] sm:$0xf] }
  0x3e   : > { %v356_v31 = vmax.f32 %v352_v28, %v348_v29  ;;  %v344_v32 = vld [vmem:[#allocation3 + $0x1c] sm:$0xf] }
  0x3f   : > { %v353_v33 = vmax.f32 %v339_v30, %v344_v32 }
  0x40   : > { %360 = vst.msk [vmem:[%s163_s8 + $0x8] sm:$0xf] %vm325_vm2, %v356_v31  ;;  %v349_v34 = vld [vmem:[#allocation3 + $0x20] sm:$0xf] }
  0x41   : > { %v357_v35 = vmax.f32 %v353_v33, %v349_v34 }
  0x43   : > { %361 = vst.msk [vmem:[%s163_s8 + $0xc] sm:$0xf] %vm325_vm2, %v357_v35 }
  0x44   : > { %509 = shalt.err (!%p506_p3)
}
  0x45   : > { %s510_s27 = scalar_lea.hbm %s697_s19, 256  ;;  %s514_s30 = scalar_lea.hbm %s746_s3, 512 }
  0x46   : > { %p511_p4 = scmp.ne.s32.totalorder %s697_s19, %s510_s27  ;;  %p515_p9 = scmp.lt.u32.totalorder %s697_s19, %s746_s3 }
  0x47   : > { %p516_p10 = scmp.lt.u32.totalorder %s514_s30, %s510_s27  ;;  %p518_p12 = scmp.lt.u32.totalorder %s510_s27, %s697_s19 }
  0x48   : > { %p512_p7 = pnand %p511_p4, %p622_p5 }
  0x49   : > { %p517_p11 = por %p516_p10, %p515_p9 }
  0x4a   : > { %p513_p8 = pneg %p512_p7 }
  0x4b   : > { %p519_p13 = por %p518_p12, %p517_p11 }
  0x4d   : > { %p520_p0 = pnand %p519_p13, %p513_p8 }
  0x4f   : > { %523 = shalt.err (!%p520_p0)
}
  0x50   : > { %s562_s6 = smov 64   ;;  %s563_s7 = smov 4  }
  0x51   : > { %454 = dma.vmem_to_hbm [thread:$0]  (%p622_p5), %s691_s9, 256, %s697_s19, %s702_s16, %s562_s6, %s562_s6, %s563_s7  }
  0x52 PF: > { %p460_p1 = scmp.ge.s32.totalorder %s558_s15, 2  ;;  %s391_s8 = sand.u32 1, %s546_s12  }
  0x53   : > { %s392_s10 = scalar_lea.sflag [#allocation5], %s391_s8 }
  0x54   : > { %p457_p2 = pnand %p460_p1, %p626_p6 }
  0x56   : > { %541 = dma.done.wait (!%p457_p2), %s392_s10, 256  }
  0x57   : > { %543 = vsyncadd (!%p457_p2), %s392_s10, 4294967040  ;;  %p13_p3 = scmp.ge.s32.totalorder %s609_s18, 4   ;;  %s749_s12 = smov %s550_s13 }
  0x58   : > { %s750_s13 = smov %s554_s14  ;;  %s751_s14 = smov %s620_s21 }
  0x59   : > { %s752_s15 = smov %s609_s18  ;;  %15 = sbr.rel (!%p13_p3) target bundleno = 3 (0x3), region = 99 }
  0x60   :  { %397 = vsyncpa [#allocation5], 1 }
  0x61   :  { %399 = vsyncpa [#allocation5 + $0x1], 1 }

// kernel: res_stem_in.2
= control target key start
LH: loop header
LB: loop body
LE: loop exit
PB: predicated region body
PF: predicated region fallthrough
CT: control target
= control target key end

     0   :  { %v547_v0 = vmov 0   ;;  %vm202_vm0 = vcmask 556032   ;;  %vm227_vm1 = vcmask 1041408   ;;  %vm328_vm2 = vcmask 130048   ;;  %s821_s1 = inlined_call_operand.vmem [shape: bf16[196,16], index: 1, kind: input, shape index: {}]   ;;  %s822_s0 = inlined_call_operand.vmem [shape: bf16[128,196], index: 0, kind: input, shape index: {}]   ;;  %s823_s2 = inlined_call_operand.vmem [shape: f32[128,16], index: 2, kind: output, shape index: {0}]   ;;  %s824_s3 = inlined_call_operand.vmem [shape: f32[1,2,16], index: 3, kind: output, shape index: {1}]  }
   0x1   :  { %231 = vmatprep.subr.bf16.mxu0 %v547_v0  ;;  %v510_v1 = vld [vmem:[%s821_s1] sm:$0xff]   ;;  %483 = vmatprep.subr.bf16.mxu1 %v547_v0  ;;  %v511_v2 = vld [vmem:[%s821_s1 + $0x8] sm:$0xff]   ;;  %v512_v3 = vld [vmem:[%s821_s1 + $0x10] sm:$0xff]   ;;  %vm382_vm3 = vcmask 122880  }
   0x2   :  { %232 = vmatpush1.bf16.msra.mxu0 %v510_v1  ;;  %496 = vmatpush1.bf16.msra.mxu1 %v510_v1  ;;  %v513_v4 = vld [vmem:[%s821_s1 + $0x18] sm:$0xff]   ;;  %v525_v5 = vld [vmem:[%s822_s0 + $0x4] ss:$8 sps:$4 sm:$0xff]   ;;  %v516_v9 = vld [vmem:[%s821_s1 + $0x30] sm:$0xff]  }
   0x3   :  { %233 = vmatprep.subr.bf16.mxu0 %v547_v0  ;;  %484 = vmatprep.subr.bf16.mxu1 %v547_v0  ;;  %v514_v6 = vld [vmem:[%s821_s1 + $0x20] sm:$0xff]   ;;  %v515_v8 = vld [vmem:[%s821_s1 + $0x28] sm:$0xff]   ;;  %v517_v10 = vld [vmem:[%s821_s1 + $0x38] sm:$0xff]  }
   0x4   :  { %475 = vmatprep.mubr.msk.bf16.mxu0 %vm202_vm0, %v525_v5  ;;  %v531_v7 = vld [vmem:[%s822_s0 + $0x44] ss:$8 sps:$4 sm:$0xff]   ;;  %v520_v13 = vld [vmem:[%s821_s1 + $0x50] sm:$0xff]   ;;  %v521_v14 = vld [vmem:[%s821_s1 + $0x58] sm:$0xff]  }
   0x5   :  { %479 = vmatprep.mubr.msk.bf16.mxu1 %vm202_vm0, %v531_v7  ;;  %v518_v11 = vld [vmem:[%s821_s1 + $0x40] sm:$0xff]   ;;  %v519_v12 = vld [vmem:[%s821_s1 + $0x48] sm:$0xff]   ;;  %v526_v19 = vld [vmem:[%s822_s0 + $0x14] ss:$8 sps:$4 sm:$0xff]  }
   0x6   :  { %234 = vmatpush1.bf16.msra.mxu0 %v511_v2  ;;  %497 = vmatpush1.bf16.msra.mxu1 %v511_v2  ;;  %v522_v15 = vld [vmem:[%s821_s1 + $0x60] ss:$0 sps:$4 sm:$0x33]   ;;  %v535_v20 = vld [vmem:[%s822_s0 + $0x54] ss:$8 sps:$4 sm:$0xff]  }
   0x7   :  { %235 = vmatprep.subr.bf16.mxu0 %v547_v0  ;;  %485 = vmatprep.subr.bf16.mxu1 %v547_v0  ;;  %v229_v16 = vsel %vm227_vm1, %v522_v15, 0  ;;  %v523_v17 = vld [vmem:[%s822_s0] ss:$8 sps:$4 sm:$0xff]   ;;  %v528_v21 = vld [vmem:[%s822_s0 + $0x10] ss:$8 sps:$4 sm:$0xff]  }
   0x8   :  { %v529_v18 = vld [vmem:[%s822_s0 + $0x40] ss:$8 sps:$4 sm:$0xff]   ;;  %v537_v22 = vld [vmem:[%s822_s0 + $0x50] ss:$8 sps:$4 sm:$0xff]   ;;  %v532_v23 = vld [vmem:[%s822_s0 + $0x24] ss:$8 sps:$4 sm:$0xff]  }
   0x9   :  { %v541_v24 = vld [vmem:[%s822_s0 + $0x64] ss:$8 sps:$4 sm:$0xff]   ;;  %v534_v25 = vld [vmem:[%s822_s0 + $0x20] ss:$8 sps:$4 sm:$0xff]   ;;  %v538_v27 = vld [vmem:[%s822_s0 + $0x34] ss:$8 sps:$4 sm:$0xff]  }
   0xa   :  { %236 = vmatpush1.bf16.msra.mxu0 %v512_v3  ;;  %498 = vmatpush1.bf16.msra.mxu1 %v512_v3  ;;  %v543_v26 = vld [vmem:[%s822_s0 + $0x60] ss:$8 sps:$4 sm:$0xff]   ;;  %v544_v28 = vld [vmem:[%s822_s0 + $0x74] ss:$8 sps:$4 sm:$0xff]   ;;  %v540_v29 = vld [vmem:[%s822_s0 + $0x30] ss:$8 sps:$4 sm:$0xff]  }
   0xb   :  { %237 = vmatprep.subr.bf16.mxu0 %v547_v0  ;;  %486 = vmatprep.subr.bf16.mxu1 %v547_v0  ;;  %v546_v30 = vld [vmem:[%s822_s0 + $0x70] ss:$8 sps:$4 sm:$0xff]  }
   0xe   :  { %238 = vmatpush1.bf16.msra.mxu0 %v513_v4  ;;  %499 = vmatpush1.bf16.msra.mxu1 %v513_v4 }
   0xf   :  { %239 = vmatprep.subr.bf16.mxu0 %v547_v0  ;;  %487 = vmatprep.subr.bf16.mxu1 %v547_v0 }
  0x12   :  { %240 = vmatpush1.bf16.msra.mxu0 %v514_v6  ;;  %500 = vmatpush1.bf16.msra.mxu1 %v514_v6 }
  0x13   :  { %241 = vmatprep.subr.bf16.mxu0 %v547_v0  ;;  %488 = vmatprep.subr.bf16.mxu1 %v547_v0 }
  0x16   :  { %242 = vmatpush1.bf16.msra.mxu0 %v515_v8  ;;  %501 = vmatpush1.bf16.msra.mxu1 %v515_v8 }
  0x17   :  { %243 = vmatprep.subr.bf16.mxu0 %v547_v0  ;;  %489 = vmatprep.subr.bf16.mxu1 %v547_v0 }
  0x1a   :  { %244 = vmatpush1.bf16.msra.mxu0 %v516_v9  ;;  %502 = vmatpush1.bf16.msra.mxu1 %v516_v9 }
  0x1b   :  { %245 = vmatprep.subr.bf16.mxu0 %v547_v0  ;;  %490 = vmatprep.subr.bf16.mxu1 %v547_v0 }
  0x1e   :  { %246 = vmatpush1.bf16.msra.mxu0 %v517_v10  ;;  %503 = vmatpush1.bf16.msra.mxu1 %v517_v10 }
  0x1f   :  { %247 = vmatprep.subr.bf16.mxu0 %v547_v0  ;;  %491 = vmatprep.subr.bf16.mxu1 %v547_v0 }
  0x22   :  { %248 = vmatpush1.bf16.msra.mxu0 %v518_v11  ;;  %504 = vmatpush1.bf16.msra.mxu1 %v518_v11 }
  0x23   :  { %249 = vmatprep.subr.bf16.mxu0 %v547_v0  ;;  %492 = vmatprep.subr.bf16.mxu1 %v547_v0 }
  0x26   :  { %250 = vmatpush1.bf16.msra.mxu0 %v519_v12  ;;  %505 = vmatpush1.bf16.msra.mxu1 %v519_v12 }
  0x27   :  { %251 = vmatprep.subr.bf16.mxu0 %v547_v0  ;;  %493 = vmatprep.subr.bf16.mxu1 %v547_v0 }
  0x2a   :  { %252 = vmatpush1.bf16.msra.mxu0 %v520_v13  ;;  %506 = vmatpush1.bf16.msra.mxu1 %v520_v13 }
  0x2b   :  { %253 = vmatprep.subr.bf16.mxu0 %v547_v0  ;;  %494 = vmatprep.subr.bf16.mxu1 %v547_v0 }
  0x2e   :  { %254 = vmatpush1.bf16.msra.mxu0 %v521_v14  ;;  %507 = vmatpush1.bf16.msra.mxu1 %v521_v14 }
  0x2f   :  { %255 = vmatprep.subr.bf16.mxu0 %v547_v0  ;;  %495 = vmatprep.subr.bf16.mxu1 %v547_v0 }
  0x32   :  { %256 = vmatpush1.bf16.msra.mxu0 %v229_v16  ;;  %508 = vmatpush1.bf16.msra.mxu1 %v229_v16 }
  0x35   :  { %264 = vmatmul.mubr.bf16.vlgmr.msra.gmra.mrb[0].mxu0 %v523_v17  ;;  %296 = vmatmul.mubr.bf16.vlgmr.msra.gmra.mrb[0].mxu1 %v529_v18 }
  0x36   :  { %476 = vmatprep.mubr.msk.bf16.mxu0 %vm202_vm0, %v526_v19  ;;  %480 = vmatprep.mubr.msk.bf16.mxu1 %vm202_vm0, %v535_v20 }
  0x3d   :  { %272 = vmatmul.mubr.bf16.gmra.mrb[4].mxu0 %v528_v21  ;;  %304 = vmatmul.mubr.bf16.gmra.mrb[4].mxu1 %v537_v22 }
  0x3e   :  { %477 = vmatprep.mubr.msk.bf16.mxu0 %vm202_vm0, %v532_v23  ;;  %481 = vmatprep.mubr.msk.bf16.mxu1 %vm202_vm0, %v541_v24 }
  0x45   :  { %280 = vmatmul.mubr.bf16.gmra.mrb[8].mxu0 %v534_v25  ;;  %312 = vmatmul.mubr.bf16.gmra.mrb[8].mxu1 %v543_v26 }
  0x46   :  { %478 = vmatprep.mubr.msk.bf16.mxu0 %vm202_vm0, %v538_v27  ;;  %482 = vmatprep.mubr.msk.bf16.mxu1 %vm202_vm0, %v544_v28 }
  0x4d   :  { %288 = vmatmul.mubr.bf16.gmra.mrb[12].mxu0 %v540_v29  ;;  %320 = vmatmul.mubr.bf16.gmra.mrb[12].mxu1 %v546_v30 }
 0x108   :  { %v265_v31 = vpop.f32.mrb[0].mxu0  ;;  %v689_v32 = vpop.f32.mrb[0].mxu1 }
 0x109   :  { %329 = vst.msk [vmem:[%s823_s2] sm:$0xff] %vm328_vm2, %v265_v31  ;;  %v384_v33 = vmul.f32 %v265_v31, %v265_v31  ;;  %v267_v34 = vpop.f32.mrb[1].mxu0  ;;  %337 = vst.msk [vmem:[%s823_s2 + $0x40] sm:$0xff] %vm328_vm2, %v689_v32  ;;  %v299_v35 = vpop.f32.mrb[1].mxu1  ;;  %v345_v38 = vsel %vm328_vm2, %v265_v31, 0.0  ;;  %v392_v28 = vmul.f32 %v689_v32, %v689_v32 }
 0x10a   :  { %v268_v36 = vpop.f32.mrb[2].mxu0  ;;  %v700_v37 = vpop.f32.mrb[2].mxu1 }
 0x10b   :  { %330 = vst.msk [vmem:[%s823_s2 + $0x8] sm:$0xff] %vm328_vm2, %v268_v36  ;;  %v346_v39 = vsel %vm328_vm2, %v268_v36, 0.0  ;;  %v385_v40 = vmul.f32 %v268_v36, %v268_v36  ;;  %v270_v41 = vpop.f32.mrb[3].mxu0  ;;  %338 = vst.msk [vmem:[%s823_s2 + $0x48] sm:$0xff] %vm328_vm2, %v700_v37  ;;  %v302_v42 = vpop.f32.mrb[3].mxu1  ;;  %v400_v44 = vsel %vm328_vm2, %v384_v33, 0.0 }
 0x10c   :  { %v347_v43 = vadd.f32 %v346_v39, %v345_v38  ;;  %v360_v38 = vsel %vm328_vm2, %v689_v32, 0.0  ;;  %v393_v39 = vmul.f32 %v700_v37, %v700_v37 }
 0x10d   :  { %v401_v45 = vsel %vm328_vm2, %v385_v40, 0.0 }
 0x10e   :  { %v402_v46 = vadd.f32 %v401_v45, %v400_v44  ;;  %v362_v44 = vsel %vm328_vm2, %v700_v37, 0.0 }
 0x110   :  { %v273_v47 = vpop.f32.mrb[4].mxu0  ;;  %v715_v48 = vpop.f32.mrb[4].mxu1 }
 0x111   :  { %331 = vst.msk [vmem:[%s823_s2 + $0x10] sm:$0xff] %vm328_vm2, %v273_v47  ;;  %v348_v49 = vsel %vm328_vm2, %v273_v47, 0.0  ;;  %v386_v50 = vmul.f32 %v273_v47, %v273_v47  ;;  %v275_v51 = vpop.f32.mrb[5].mxu0  ;;  %339 = vst.msk [vmem:[%s823_s2 + $0x50] sm:$0xff] %vm328_vm2, %v715_v48  ;;  %v307_v52 = vpop.f32.mrb[5].mxu1  ;;  %v394_v45 = vmul.f32 %v715_v48, %v715_v48  ;;  %v364_v32 = vsel %vm328_vm2, %v715_v48, 0.0 }
 0x112   :  { %v349_v53 = vadd.f32 %v348_v49, %v347_v43  ;;  %v276_v54 = vpop.f32.mrb[6].mxu0  ;;  %v727_v55 = vpop.f32.mrb[6].mxu1  ;;  %v415_v43 = vsel %vm328_vm2, %v392_v28, 0.0  ;;  %v417_v49 = vsel %vm328_vm2, %v393_v39, 0.0 }
 0x113   :  { %v403_v56 = vsel %vm328_vm2, %v386_v50, 0.0  ;;  %332 = vst.msk [vmem:[%s823_s2 + $0x18] sm:$0xff] %vm328_vm2, %v276_v54  ;;  %v350_v57 = vsel %vm328_vm2, %v276_v54, 0.0  ;;  %v387_v58 = vmul.f32 %v276_v54, %v276_v54  ;;  %v278_v59 = vpop.f32.mrb[7].mxu0  ;;  %340 = vst.msk [vmem:[%s823_s2 + $0x58] sm:$0xff] %vm328_vm2, %v727_v55  ;;  %v310_v60 = vpop.f32.mrb[7].mxu1  ;;  %v395_v50 = vmul.f32 %v727_v55, %v727_v55 }
 0x114   :  { %v404_v61 = vadd.f32 %v403_v56, %v402_v46  ;;  %v351_v62 = vadd.f32 %v350_v57, %v349_v53  ;;  %v419_v53 = vsel %vm328_vm2, %v394_v45, 0.0  ;;  %v366_v37 = vsel %vm328_vm2, %v727_v55, 0.0 }
 0x115   :  { %v405_v63 = vsel %vm328_vm2, %v387_v58, 0.0  ;;  %v421_v58 = vsel %vm328_vm2, %v395_v50, 0.0 }
 0x116   :  { %v406_v0 = vadd.f32 %v405_v63, %v404_v61 }
 0x118   :  { %v281_v1 = vpop.f32.mrb[8].mxu0  ;;  %v741_v2 = vpop.f32.mrb[8].mxu1 }
 0x119   :  { %333 = vst.msk [vmem:[%s823_s2 + $0x20] sm:$0xff] %vm328_vm2, %v281_v1  ;;  %v352_v3 = vsel %vm328_vm2, %v281_v1, 0.0  ;;  %v388_v4 = vmul.f32 %v281_v1, %v281_v1  ;;  %v283_v5 = vpop.f32.mrb[9].mxu0  ;;  %341 = vst.msk [vmem:[%s823_s2 + $0x60] sm:$0xff] %vm328_vm2, %v741_v2  ;;  %v315_v6 = vpop.f32.mrb[9].mxu1  ;;  %v396_v54 = vmul.f32 %v741_v2, %v741_v2  ;;  %v368_v48 = vsel %vm328_vm2, %v741_v2, 0.0 }
 0x11a   :  { %v353_v7 = vadd.f32 %v352_v3, %v351_v62  ;;  %v284_v8 = vpop.f32.mrb[10].mxu0  ;;  %v316_v9 = vpop.f32.mrb[10].mxu1 }
 0x11b   :  { %v407_v10 = vsel %vm328_vm2, %v388_v4, 0.0  ;;  %334 = vst.msk [vmem:[%s823_s2 + $0x28] sm:$0xff] %vm328_vm2, %v284_v8  ;;  %v354_v11 = vsel %vm328_vm2, %v284_v8, 0.0  ;;  %v389_v12 = vmul.f32 %v284_v8, %v284_v8  ;;  %v286_v13 = vpop.f32.mrb[11].mxu0  ;;  %342 = vst.msk [vmem:[%s823_s2 + $0x68] sm:$0xff] %vm328_vm2, %v316_v9  ;;  %v318_v14 = vpop.f32.mrb[11].mxu1  ;;  %v397_v59 = vmul.f32 %v316_v9, %v316_v9 }
 0x11c   :  { %v408_v15 = vadd.f32 %v407_v10, %v406_v0  ;;  %v355_v16 = vadd.f32 %v354_v11, %v353_v7  ;;  %v423_v63 = vsel %vm328_vm2, %v396_v54, 0.0  ;;  %v370_v0 = vsel %vm328_vm2, %v316_v9, 0.0 }
 0x11d   :  { %v409_v17 = vsel %vm328_vm2, %v389_v12, 0.0  ;;  %v425_v4 = vsel %vm328_vm2, %v397_v59, 0.0 }
 0x11e   :  { %v410_v18 = vadd.f32 %v409_v17, %v408_v15 }
 0x120   :  { %v289_v19 = vpop.f32.mrb[12].mxu0  ;;  %v321_v20 = vpop.f32.mrb[12].mxu1 }
 0x121   :  { %335 = vst.msk [vmem:[%s823_s2 + $0x30] sm:$0xff] %vm328_vm2, %v289_v19  ;;  %v356_v21 = vsel %vm328_vm2, %v289_v19, 0.0  ;;  %v390_v22 = vmul.f32 %v289_v19, %v289_v19  ;;  %v291_v23 = vpop.f32.mrb[13].mxu0  ;;  %343 = vst.msk [vmem:[%s823_s2 + $0x70] sm:$0xff] %vm328_vm2, %v321_v20  ;;  %v323_v24 = vpop.f32.mrb[13].mxu1  ;;  %v398_v60 = vmul.f32 %v321_v20, %v321_v20  ;;  %v372_v55 = vsel %vm328_vm2, %v321_v20, 0.0 }
 0x122   :  { %v357_v25 = vadd.f32 %v356_v21, %v355_v16  ;;  %v292_v26 = vpop.f32.mrb[14].mxu0  ;;  %v324_v27 = vpop.f32.mrb[14].mxu1 }
 0x123   :  { %v411_v29 = vsel %vm328_vm2, %v390_v22, 0.0  ;;  %336 = vst.msk [vmem:[%s823_s2 + $0x38] sm:$0xff] %vm328_vm2, %v292_v26  ;;  %v358_v30 = vsel %vm328_vm2, %v292_v26, 0.0  ;;  %v391_v31 = vmul.f32 %v292_v26, %v292_v26  ;;  %v294_v33 = vpop.f32.mrb[15].mxu0  ;;  %344 = vst.msk [vmem:[%s823_s2 + $0x78] sm:$0xff] %vm328_vm2, %v324_v27  ;;  %v326_v34 = vpop.f32.mrb[15].mxu1  ;;  %v399_v6 = vmul.f32 %v324_v27, %v324_v27 }
 0x124   :  { %v412_v35 = vadd.f32 %v411_v29, %v410_v18  ;;  %v359_v36 = vadd.f32 %v358_v30, %v357_v25  ;;  %v427_v5 = vsel %vm328_vm2, %v398_v60, 0.0  ;;  %v374_v2 = vsel %vm328_vm2, %v324_v27, 0.0 }
 0x125   :  { %v413_v40 = vsel %vm328_vm2, %v391_v31, 0.0  ;;  %v429_v12 = vsel %vm328_vm2, %v399_v6, 0.0 }
 0x126   :  { %v361_v41 = vadd.f32 %v360_v38, %v359_v36  ;;  %v414_v42 = vadd.f32 %v413_v40, %v412_v35 }
 0x128   :  { %v363_v46 = vadd.f32 %v362_v44, %v361_v41  ;;  %v416_v47 = vadd.f32 %v415_v43, %v414_v42 }
 0x12a   :  { %v418_v51 = vadd.f32 %v417_v49, %v416_v47  ;;  %v365_v52 = vadd.f32 %v364_v32, %v363_v46 }
 0x12c   :  { %v367_v56 = vadd.f32 %v366_v37, %v365_v52  ;;  %v420_v57 = vadd.f32 %v419_v53, %v418_v51 }
 0x12e   :  { %v369_v61 = vadd.f32 %v368_v48, %v367_v56  ;;  %v422_v62 = vadd.f32 %v421_v58, %v420_v57 }
 0x130   :  { %v424_v1 = vadd.f32 %v423_v63, %v422_v62  ;;  %v371_v3 = vadd.f32 %v370_v0, %v369_v61 }
 0x132   :  { %v426_v7 = vadd.f32 %v425_v4, %v424_v1  ;;  %v373_v8 = vadd.f32 %v372_v55, %v371_v3 }
 0x134   :  { %v428_v10 = vadd.f32 %v427_v5, %v426_v7  ;;  %v375_v11 = vadd.f32 %v374_v2, %v373_v8 }
 0x136   :  { %v376_v13 = vrot.slane %v375_v11, 4  ;;  %v430_v14 = vadd.f32 %v429_v12, %v428_v10 }
 0x138   :  { %v377_v9 = vadd.f32 %v376_v13, %v375_v11  ;;  %v431_v15 = vrot.slane %v430_v14, 4 }
 0x13a   :  { %v378_v16 = vrot.slane %v377_v9, 2  ;;  %v432_v17 = vadd.f32 %v431_v15, %v430_v14 }
 0x13c   :  { %v379_v18 = vadd.f32 %v378_v16, %v377_v9  ;;  %v433_v19 = vrot.slane %v432_v17, 2 }
 0x13e   :  { %v380_v20 = vrot.slane %v379_v18, 1  ;;  %v434_v21 = vadd.f32 %v433_v19, %v432_v17 }
 0x140   :  { %v381_v22 = vadd.f32 %v380_v20, %v379_v18  ;;  %v435_v23 = vrot.slane %v434_v21, 1 }
 0x142   :  { %383 = vst.msk [vmem:[%s824_s3] sm:$0x1] %vm382_vm3, %v381_v22  ;;  %v436_v24 = vadd.f32 %v435_v23, %v434_v21 }
 0x144   :  { %437 = vst.msk [vmem:[%s824_s3 + $0x1] sm:$0x1] %vm382_vm3, %v436_v24 }

</bundles_post_ra>
